<compile_context>
chip_gen: v6e
topology: v6e:2x2x1
jax: 0.10.0
libtpu: 0.0.40
codegen_flags: <defaults>
</compile_context>

<pallas_src>
import functools

import jax
import jax.numpy as jnp
from jax.experimental import pallas as pl
from jax.experimental.pallas import tpu as pltpu


def _round_up(v, m):
    return ((v + m - 1) // m) * m


def _pick_lane_tile(p_pad):
    # Tile the folded (batch*centroid) lane axis in multiples of 128 when possible.
    for cand in (1024, 512, 256, 128):
        if p_pad > cand and p_pad % cand == 0:
            return cand
    return p_pad


# ----------------------------------------------------------------------------
# Kernel 1: fused pairwise squared distances + exact ball-query.
# One program per batch element.  Emits only (M, k_s) int32 indices per scale;
# the (M, N) distance matrix lives only in VMEM/vregs.  Index selection runs in
# f32 (indices < 2**24 are exact) on plain lane reductions.
# ----------------------------------------------------------------------------
def _dist_ballquery_kernel(ct2_ref, sup_ref, cc_ref, xx_ref, *out_refs,
                           radii, ks, n_points):
    cross = jnp.dot(ct2_ref[0], sup_ref[0], preferred_element_type=jnp.float32)   # (M, N)
    dists = cross + cc_ref[0] + xx_ref[0]                                          # (M, N)
    m, n = dists.shape
    lane_iota = jax.lax.broadcasted_iota(jnp.int32, (m, n), 1).astype(jnp.float32)
    sentinel = jnp.float32(n_points)

    for s, (radius, k) in enumerate(zip(radii, ks)):
        # torch: idx[dists > r^2] = N ; topk(smallest) ; pad sentinel with first valid (else 0)
        val = jnp.where(dists > radius * radius, sentinel, lane_iota)               # (M, N)
        col_iota = jax.lax.broadcasted_iota(jnp.int32, (m, k), 1)
        idx = jnp.full((m, k), sentinel, dtype=jnp.float32)
        for j in range(k):                               # k is small (8/16): unrolled argmin sweep
            cur = jnp.min(val, axis=1, keepdims=True)    # (M, 1) smallest remaining index
            idx = jnp.where(col_iota == j, cur, idx)
            val = jnp.where(val == cur, sentinel, val)
        first = idx[:, 0:1]
        first = jnp.where(first == sentinel, 0.0, first)
        idx = jnp.where(idx == sentinel, first, idx)
        out_refs[s][0] = idx.astype(jnp.int32)


def dist_ball_query(centroids, support, radii, ks):
    # centroids: (B, C, M), support: (B, C, N) -> tuple of (B, M, k_s) int32
    B, C, M = centroids.shape
    N = support.shape[2]
    assert N < (1 << 24), "f32 index selection requires N < 2**24"
    cen = centroids.astype(jnp.float32)
    sup = support.astype(jnp.float32)
    ct2 = -2.0 * jnp.transpose(cen, (0, 2, 1))                    # (B, M, C)
    cc = jnp.sum(cen * cen, axis=1)[:, :, None]                   # (B, M, 1)
    xx = jnp.sum(sup * sup, axis=1, keepdims=True)                # (B, 1, N)

    kern = functools.partial(_dist_ballquery_kernel,
                             radii=tuple(float(r) for r in radii),
                             ks=tuple(int(k) for k in ks),
                             n_points=N)
    out_shape = tuple(jax.ShapeDtypeStruct((B, M, int(k)), jnp.int32) for k in ks)
    out_specs = tuple(pl.BlockSpec((1, M, int(k)), lambda b: (b, 0, 0)) for k in ks)
    # TODO(synk): tile the N axis (running top-k across tiles) for very large clouds.
    return pl.pallas_call(
        kern,
        out_shape=out_shape,
        grid=(B,),
        in_specs=[pl.BlockSpec((1, M, C), lambda b: (b, 0, 0)),
                  pl.BlockSpec((1, C, N), lambda b: (b, 0, 0)),
                  pl.BlockSpec((1, M, 1), lambda b: (b, 0, 0)),
                  pl.BlockSpec((1, 1, N), lambda b: (b, 0, 0))],
        out_specs=out_specs,
        compiler_params=pltpu.CompilerParams(dimension_semantics=("parallel",)),
    )(ct2, sup, cc, xx)


# ----------------------------------------------------------------------------
# Kernel 2: fused AttentionMix + multi-scale MLP (all radius scales in one call).
# Layout: channels in sublanes, points (batch folded in) in lanes.
#   x    : (C, P)            centroids, channels-first, P = B*M (lane axis)
#   y_s  : (C, K_s, P)       grouped relative features per radius scale
#   at_s : (H, C, C)         (Wk_h^T Wq_h) / sqrt(C)   (host-folded q/k convs)
#   vo_s : (H, C, C)         Wo_h Wv_h                 (host-folded v/out convs)
#   w0_s : (sumCout0, C)     layer-0 block-diag column block for scale s
#   w_l  : (sumCout_l, sumCout_{l-1})  block-diag weights, layers 1..L-1
#   b_l  : (sumCout_l, 1)
# Output: (sumCout_{L-1}, P) -- one wide lane-dense store.
# ----------------------------------------------------------------------------
def _fused_attn_mlp_kernel(*refs, num_scales, num_heads, n_layers):
    i = 0
    x_ref = refs[i]; i += 1
    y_refs = refs[i:i + num_scales]; i += num_scales
    at_refs = refs[i:i + num_scales]; i += num_scales
    vo_refs = refs[i:i + num_scales]; i += num_scales
    w0_refs = refs[i:i + num_scales]; i += num_scales
    wrest_refs = refs[i:i + n_layers - 1]; i += n_layers - 1
    b_refs = refs[i:i + n_layers]; i += n_layers
    out_ref = refs[i]

    x = x_ref[...].astype(jnp.float32)                                     # (C, P_tile)

    acc = None
    for s in range(num_scales):
        y = y_refs[s][...].astype(jnp.float32)                             # (C, K_s, P_tile)
        feat = x                                                           # residual
        for h in range(num_heads):
            # qx = (Wq_h^T Wk_h / sqrt(C))^T @ x  -- small MXU matmul
            qx = jnp.dot(at_refs[s][h].astype(jnp.float32), x,
                         preferred_element_type=jnp.float32)               # (C, P)
            # scores[k, p] = sum_c qx[c, p] * y[c, k, p]  (single broadcast+reduce)
            scores = jnp.sum(qx[:, None, :] * y, axis=0)                   # (K_s, P)
            scores = scores - jnp.max(scores, axis=0, keepdims=True)       # softmax over group
            e = jnp.exp(scores)
            w = e / jnp.sum(e, axis=0, keepdims=True)                      # (K_s, P)
            # Z[c, p] = sum_k w[k, p] * y[c, k, p] ; attention update = (Wo_h Wv_h) @ Z
            z = jnp.sum(w[None, :, :] * y, axis=1)                         # (C, P)
            feat = feat + jnp.dot(vo_refs[s][h].astype(jnp.float32), z,
                                  preferred_element_type=jnp.float32)
        # layer-0 of the block-diagonal MLP, applied as per-scale column blocks (MXU)
        contrib = jnp.dot(w0_refs[s][...].astype(jnp.float32), feat,
                          preferred_element_type=jnp.float32)              # (sumCout0, P)
        acc = contrib if acc is None else acc + contrib

    h_act = acc + b_refs[0][...].astype(jnp.float32)
    if n_layers > 1:
        h_act = jnp.where(h_act >= 0.0, h_act, 0.2 * h_act)                # LeakyReLU(0.2)
    for l in range(1, n_layers):
        w_l = wrest_refs[l - 1][...].astype(jnp.float32)
        h_act = jnp.dot(w_l, h_act, preferred_element_type=jnp.float32)
        h_act = h_act + b_refs[l][...].astype(jnp.float32)
        if l < n_layers - 1:
            h_act = jnp.where(h_act >= 0.0, h_act, 0.2 * h_act)
    out_ref[...] = h_act.astype(out_ref.dtype)


def fused_attention_mlp_multiscale(x_cp, y_list, att_list, vo_list,
                                   w0_cols, w_rest, biases, out_dtype):
    # x_cp: (C, P); y_list[s]: (C, K_s, P) -> (sumCout, P)
    C, P = x_cp.shape
    S = len(y_list)
    H = att_list[0].shape[0]
    L = len(biases)
    c_out = biases[-1].shape[0]

    p_pad = _round_up(P, 128) if P >= 128 else _round_up(P, 8)
    tp = _pick_lane_tile(p_pad)
    n_tiles = p_pad // tp
    pad = p_pad - P
    if pad:
        x_cp = jnp.pad(x_cp, ((0, 0), (0, pad)))
        y_list = [jnp.pad(y, ((0, 0), (0, 0), (0, pad))) for y in y_list]

    inputs, in_specs = [], []

    def add(arr, spec):
        inputs.append(arr)
        in_specs.append(spec)

    add(x_cp, pl.BlockSpec((C, tp), lambda i: (0, i)))
    for y in y_list:
        add(y, pl.BlockSpec((C, y.shape[1], tp), lambda i: (0, 0, i)))
    for a in att_list:
        add(a, pl.BlockSpec(a.shape, lambda i: (0, 0, 0)))
    for v in vo_list:
        add(v, pl.BlockSpec(v.shape, lambda i: (0, 0, 0)))
    for w in w0_cols:
        add(w, pl.BlockSpec(w.shape, lambda i: (0, 0)))
    for w in w_rest:
        add(w, pl.BlockSpec(w.shape, lambda i: (0, 0)))
    for b in biases:
        add(b, pl.BlockSpec(b.shape, lambda i: (0, 0)))

    kern = functools.partial(_fused_attn_mlp_kernel,
                             num_scales=S, num_heads=H, n_layers=L)
    out = pl.pallas_call(
        kern,
        out_shape=jax.ShapeDtypeStruct((c_out, p_pad), out_dtype),
        grid=(n_tiles,),
        in_specs=in_specs,
        out_specs=pl.BlockSpec((c_out, tp), lambda i: (0, i)),
        compiler_params=pltpu.CompilerParams(dimension_semantics=("parallel",)),
    )(*inputs)
    return out[:, :P]


# ----------------------------------------------------------------------------
# Host-side parameter folding (attention head folding + eval-mode BN folding)
# ----------------------------------------------------------------------------
def prepare_scale_params(attn_p, mlp_layers, num_heads, eps=1e-5):
    wq, wk, wv, wo = attn_p['wq'], attn_p['wk'], attn_p['wv'], attn_p['wo']
    C = wq.shape[1]
    norm_const = float(C) ** 0.5
    at_list, vo_list = [], []
    for h in range(num_heads):
        wq_h = wq[h * C:(h + 1) * C, :]                # (C, C)
        wk_h = wk[h * C:(h + 1) * C, :]
        wv_h = wv[h * C:(h + 1) * C, :]
        wo_h = wo[:, h * C:(h + 1) * C]                # (C, C)
        at_list.append((wk_h.T @ wq_h) / norm_const)   # (Wq_h^T Wk_h / sqrt(C))^T
        vo_list.append(wo_h @ wv_h)                    # Wo_h Wv_h
    at = jnp.stack(at_list)                            # (H, C, C)
    vo = jnp.stack(vo_list)                            # (H, C, C)

    ws, bs = [], []
    n = len(mlp_layers)
    for i, layer in enumerate(mlp_layers):
        w = layer['w']                                 # (c_out, c_in)
        b = layer['b'][:, 0]                           # (c_out,)
        if i < n - 1:                                  # fold eval-mode BatchNorm1d
            s = layer['gamma'][:, 0] * jax.lax.rsqrt(layer['var'][:, 0] + eps)
            w = w * s[:, None]
            b = s * (b - layer['mean'][:, 0]) + layer['beta'][:, 0]
        ws.append(w)                                   # channels-first (c_out, c_in)
        bs.append(b[:, None])                          # (c_out, 1)
    return at, vo, ws, bs


def _block_diag(blocks):
    rows = sum(b.shape[0] for b in blocks)
    cols = sum(b.shape[1] for b in blocks)
    out = jnp.zeros((rows, cols), blocks[0].dtype)
    r = c = 0
    for b in blocks:
        out = out.at[r:r + b.shape[0], c:c + b.shape[1]].set(b)
        r += b.shape[0]
        c += b.shape[1]
    return out


# ----------------------------------------------------------------------------
# Plain-JAX glue: farthest point sampling
# ----------------------------------------------------------------------------
def farthest_point_sample(x, n_centroids, key):
    # x: (B, C, N) -> (B, n_centroids) int32 (sequential data-dependent loop).
    B, C, N = x.shape
    farthest = jax.random.randint(key, (B,), 0, N).astype(jnp.int32)
    distance = jnp.full((B, N), 1e10, dtype=jnp.float32)
    centroids = jnp.zeros((B, n_centroids), dtype=jnp.int32)

    def body(i, state):
        cents, dist_run, far = state
        cents = cents.at[:, i].set(far)
        idx = jnp.broadcast_to(far[:, None, None], (B, C, 1))
        centroid = jnp.take_along_axis(x, idx, axis=2)               # (B, C, 1)
        d = jnp.sum((x - centroid) ** 2, axis=1)                     # (B, N)
        dist_run = jnp.minimum(dist_run, d)
        far = jnp.argmax(dist_run, axis=-1).astype(jnp.int32)
        return cents, dist_run, far

    centroids, _, _ = jax.lax.fori_loop(0, n_centroids, body,
                                        (centroids, distance, farthest))
    return centroids


# ----------------------------------------------------------------------------
# Parameter init (deterministic) and PointNetMSG forward
# ----------------------------------------------------------------------------
def init_params(key, in_channels, hid_channels, num_heads=2):
    params = {'attention': [], 'mlps': []}
    for channels in hid_channels:
        key, k1, k2, k3, k4 = jax.random.split(key, 5)
        CH = in_channels * num_heads
        s = 1.0 / (in_channels ** 0.5)
        params['attention'].append({
            'wq': jax.random.normal(k1, (CH, in_channels), jnp.float32) * s,
            'wk': jax.random.normal(k2, (CH, in_channels), jnp.float32) * s,
            'wv': jax.random.normal(k3, (CH, in_channels), jnp.float32) * s,
            'wo': jax.random.normal(k4, (in_channels, CH), jnp.float32) * (1.0 / CH ** 0.5),
        })
        layers = []
        c_in = in_channels
        for i, c_out in enumerate(channels):
            key, kw, kb, kg, kbe, km, kv = jax.random.split(key, 7)
            layer = {
                'w': jax.random.normal(kw, (c_out, c_in), jnp.float32) * (1.0 / c_in ** 0.5),
                'b': 0.01 * jax.random.normal(kb, (c_out, 1), jnp.float32),
            }
            if i < len(channels) - 1:
                layer.update({
                    'gamma': 1.0 + 0.1 * jax.random.normal(kg, (c_out, 1), jnp.float32),
                    'beta': 0.1 * jax.random.normal(kbe, (c_out, 1), jnp.float32),
                    'mean': 0.1 * jax.random.normal(km, (c_out, 1), jnp.float32),
                    'var': 1.0 + 0.1 * jnp.abs(jax.random.normal(kv, (c_out, 1), jnp.float32)),
                })
            layers.append(layer)
            c_in = c_out
        params['mlps'].append(layers)
    return params


def pointnet_msg_forward(params, xyz, point_features, config, sample_key, num_heads=2):
    n_centroids = config['n_centroids']
    radii = config['radius']
    ks = config['max_n_points']
    support = xyz if point_features is None else jnp.concatenate([xyz, point_features], axis=1)
    B, C_s, N = support.shape
    M = n_centroids
    S = len(radii)

    centroids_idx = farthest_point_sample(support, M, sample_key)                  # (B, M)
    idx_s = jnp.broadcast_to(centroids_idx[:, None, :], (B, C_s, M))
    centroids = jnp.take_along_axis(support, idx_s, axis=2)                        # (B, C_s, M)
    idx_x = jnp.broadcast_to(centroids_idx[:, None, :], (B, xyz.shape[1], M))
    new_xyz = jnp.take_along_axis(xyz, idx_x, axis=2)                              # (B, 3, M)

    # Fused dist + exact ball query: only (B, M, k_s) indices ever hit HBM.
    group_idx = dist_ball_query(centroids, support, radii, ks)

    # Host-side folding: QK/VO per head, eval-mode BN into conv, block-diag MLP.
    prepared = [prepare_scale_params(a, m, num_heads)
                for a, m in zip(params['attention'], params['mlps'])]
    n_layers = len(prepared[0][2])
    # TODO(synk): scales with different MLP depths need a per-scale fallback path.
    assert all(len(p[2]) == n_layers for p in prepared), "scale fusion needs equal MLP depth"
    att_list = [p[0] for p in prepared]
    vo_list = [p[1] for p in prepared]
    ws_bd = [_block_diag([prepared[s][2][i] for s in range(S)]) for i in range(n_layers)]
    bs_cat = [jnp.concatenate([prepared[s][3][i] for s in range(S)], axis=0)
              for i in range(n_layers)]
    w0_cols = [ws_bd[0][:, s * C_s:(s + 1) * C_s] for s in range(S)]

    # Grouped relative features, repacked lane-dense: (C_s, K_s, B*M).
    # TODO(synk): perform this gather in-kernel via scalar-prefetched indices + DMA.
    P = B * M
    y_list = []
    for s in range(S):
        k = int(ks[s])
        gidx = jnp.broadcast_to(group_idx[s].reshape(B, 1, M * k), (B, C_s, M * k))
        grp = jnp.take_along_axis(support, gidx, axis=2).reshape(B, C_s, M, k)
        grp = grp - centroids[:, :, :, None]                                       # relative feats
        y_list.append(jnp.transpose(grp, (1, 3, 0, 2)).reshape(C_s, k, P).astype(jnp.float32))

    x_cp = jnp.transpose(centroids, (1, 0, 2)).reshape(C_s, P).astype(jnp.float32)

    feat = fused_attention_mlp_multiscale(x_cp, y_list, att_list, vo_list,
                                          w0_cols, ws_bd[1:], bs_cat, xyz.dtype)   # (sumCout, P)
    features = jnp.transpose(feat.reshape(feat.shape[0], B, M), (1, 0, 2))         # (B, sumCout, M)
    return new_xyz, features


# ----------------------------------------------------------------------------
if __name__ == "__main__":
    key = jax.random.PRNGKey(0)
    B, N = 2, 64
    n_centroids = 8
    radius = [0.5, 1.0]
    max_n_points = [8, 16]
    n_feat = 1
    in_channels = 3 + n_feat
    hid_channels = [[16, 32], [16, 32]]

    key, kx, kf, ks, kp = jax.random.split(key, 5)
    xyz = jax.random.uniform(kx, (B, 3, N), jnp.float32)
    point_features = jax.random.uniform(kf, (B, n_feat, N), jnp.float32)
    params = init_params(kp, in_channels, hid_channels)
    config = dict(n_centroids=n_centroids, radius=radius, max_n_points=max_n_points)

    new_xyz, features = pointnet_msg_forward(params, xyz, point_features, config, ks)
    (new_xyz, features) = jax.block_until_ready((new_xyz, features))

    assert new_xyz.shape == (B, 3, n_centroids), new_xyz.shape
    assert features.shape == (B, hid_channels[0][-1] + hid_channels[1][-1], n_centroids), features.shape
    assert bool(jnp.all(jnp.isfinite(new_xyz))) and bool(jnp.all(jnp.isfinite(features)))
    print("KERNEL_OK")
</pallas_src>

<mosaic_0001>
module attributes {stable_mosaic.version = 11 : i64} {
  func.func @_dist_ballquery_kernel(%arg0: i32, %arg1: memref<1x8x4xf32, #tpu.memory_space<vmem>>, %arg2: memref<1x4x64xf32, #tpu.memory_space<vmem>>, %arg3: memref<1x8x1xf32, #tpu.memory_space<vmem>>, %arg4: memref<1x1x64xf32, #tpu.memory_space<vmem>>, %arg5: memref<1x8x8xi32, #tpu.memory_space<vmem>>, %arg6: memref<1x8x16xi32, #tpu.memory_space<vmem>>) attributes {dimension_semantics = [#tpu.dimension_semantics<parallel>], iteration_bounds = array<i64: 2>, scalar_prefetch = 0 : i64, scratch_operands = 0 : i64, tpu.core_type = #tpu.core_type<tc>, window_params = [{transform_indices = @transform_0, window_bounds = array<i64: 1, 8, 4>}, {transform_indices = @transform_1, window_bounds = array<i64: 1, 4, 64>}, {transform_indices = @transform_2, window_bounds = array<i64: 1, 8, 1>}, {transform_indices = @transform_3, window_bounds = array<i64: 1, 1, 64>}, {transform_indices = @transform_4, window_bounds = array<i64: 1, 8, 8>}, {transform_indices = @transform_5, window_bounds = array<i64: 1, 8, 16>}]} {
    %c0 = arith.constant 0 : index
    %c0_0 = arith.constant 0 : index
    %c0_1 = arith.constant 0 : index
    %0 = vector.load %arg1[%c0, %c0_0, %c0_1] : memref<1x8x4xf32, #tpu.memory_space<vmem>>, vector<1x8x4xf32>
    %1 = vector.shape_cast %0 : vector<1x8x4xf32> to vector<8x4xf32>
    %c0_2 = arith.constant 0 : index
    %c0_3 = arith.constant 0 : index
    %c0_4 = arith.constant 0 : index
    %2 = vector.load %arg2[%c0_2, %c0_3, %c0_4] : memref<1x4x64xf32, #tpu.memory_space<vmem>>, vector<1x4x64xf32>
    %3 = vector.shape_cast %2 : vector<1x4x64xf32> to vector<4x64xf32>
    %cst = arith.constant dense<0.000000e+00> : vector<8x64xf32>
    %4 = tpu.matmul %1, %3, %cst {dimension_numbers = #tpu.dot_dimension_numbers<[1], [0], [0], [1], [0, 0, 1, 1], [], []>} : vector<8x4xf32>, vector<4x64xf32>, vector<8x64xf32> -> vector<8x64xf32>
    %c0_5 = arith.constant 0 : index
    %c0_6 = arith.constant 0 : index
    %c0_7 = arith.constant 0 : index
    %5 = vector.load %arg3[%c0_5, %c0_6, %c0_7] : memref<1x8x1xf32, #tpu.memory_space<vmem>>, vector<1x8x1xf32>
    %6 = vector.shape_cast %5 : vector<1x8x1xf32> to vector<8x1xf32>
    %7 = vector.broadcast %6 : vector<8x1xf32> to vector<8x64xf32>
    %8 = arith.addf %4, %7 : vector<8x64xf32>
    %c0_8 = arith.constant 0 : index
    %c0_9 = arith.constant 0 : index
    %c0_10 = arith.constant 0 : index
    %9 = vector.load %arg4[%c0_8, %c0_9, %c0_10] : memref<1x1x64xf32, #tpu.memory_space<vmem>>, vector<1x1x64xf32>
    %10 = vector.shape_cast %9 : vector<1x1x64xf32> to vector<1x64xf32>
    %11 = vector.broadcast %10 : vector<1x64xf32> to vector<8x64xf32>
    %12 = arith.addf %8, %11 : vector<8x64xf32>
    %13 = tpu.iota {dimensions = array<i32: 1>} : vector<8x64xi32>
    %14 = arith.sitofp %13 : vector<8x64xi32> to vector<8x64xf32>
    %cst_11 = arith.constant 2.500000e-01 : f32
    %15 = vector.broadcast %cst_11 : f32 to vector<8x64xf32>
    %16 = arith.cmpf ogt, %12, %15 : vector<8x64xf32>
    %cst_12 = arith.constant 6.400000e+01 : f32
    %17 = vector.broadcast %cst_12 : f32 to vector<8x64xf32>
    %18 = arith.select %16, %17, %14 : vector<8x64xi1>, vector<8x64xf32>
    %19 = tpu.iota {dimensions = array<i32: 1>} : vector<8x8xi32>
    %cst_13 = arith.constant 6.400000e+01 : f32
    %20 = vector.broadcast %cst_13 : f32 to vector<8x8xf32>
    %cst_14 = arith.constant dense<0x7F800000> : vector<8xf32>
    %21 = vector.multi_reduction <minimumf>, %18, %cst_14 [1] : vector<8x64xf32> to vector<8xf32>
    %22 = vector.shape_cast %21 : vector<8xf32> to vector<8x1xf32>
    %c0_i32 = arith.constant 0 : i32
    %23 = vector.broadcast %c0_i32 : i32 to vector<8x8xi32>
    %24 = arith.cmpi eq, %19, %23 : vector<8x8xi32>
    %25 = vector.shape_cast %22 : vector<8x1xf32> to vector<8x1xf32>
    %26 = vector.broadcast %25 : vector<8x1xf32> to vector<8x8xf32>
    %27 = arith.select %24, %26, %20 : vector<8x8xi1>, vector<8x8xf32>
    %28 = vector.broadcast %22 : vector<8x1xf32> to vector<8x64xf32>
    %29 = arith.cmpf oeq, %18, %28 : vector<8x64xf32>
    %cst_15 = arith.constant 6.400000e+01 : f32
    %30 = vector.broadcast %cst_15 : f32 to vector<8x64xf32>
    %31 = arith.select %29, %30, %18 : vector<8x64xi1>, vector<8x64xf32>
    %cst_16 = arith.constant dense<0x7F800000> : vector<8xf32>
    %32 = vector.multi_reduction <minimumf>, %31, %cst_16 [1] : vector<8x64xf32> to vector<8xf32>
    %33 = vector.shape_cast %32 : vector<8xf32> to vector<8x1xf32>
    %c1_i32 = arith.constant 1 : i32
    %34 = vector.broadcast %c1_i32 : i32 to vector<8x8xi32>
    %35 = arith.cmpi eq, %19, %34 : vector<8x8xi32>
    %36 = vector.shape_cast %33 : vector<8x1xf32> to vector<8x1xf32>
    %37 = vector.broadcast %36 : vector<8x1xf32> to vector<8x8xf32>
    %38 = arith.select %35, %37, %27 : vector<8x8xi1>, vector<8x8xf32>
    %39 = vector.broadcast %33 : vector<8x1xf32> to vector<8x64xf32>
    %40 = arith.cmpf oeq, %31, %39 : vector<8x64xf32>
    %cst_17 = arith.constant 6.400000e+01 : f32
    %41 = vector.broadcast %cst_17 : f32 to vector<8x64xf32>
    %42 = arith.select %40, %41, %31 : vector<8x64xi1>, vector<8x64xf32>
    %cst_18 = arith.constant dense<0x7F800000> : vector<8xf32>
    %43 = vector.multi_reduction <minimumf>, %42, %cst_18 [1] : vector<8x64xf32> to vector<8xf32>
    %44 = vector.shape_cast %43 : vector<8xf32> to vector<8x1xf32>
    %c2_i32 = arith.constant 2 : i32
    %45 = vector.broadcast %c2_i32 : i32 to vector<8x8xi32>
    %46 = arith.cmpi eq, %19, %45 : vector<8x8xi32>
    %47 = vector.shape_cast %44 : vector<8x1xf32> to vector<8x1xf32>
    %48 = vector.broadcast %47 : vector<8x1xf32> to vector<8x8xf32>
    %49 = arith.select %46, %48, %38 : vector<8x8xi1>, vector<8x8xf32>
    %50 = vector.broadcast %44 : vector<8x1xf32> to vector<8x64xf32>
    %51 = arith.cmpf oeq, %42, %50 : vector<8x64xf32>
    %cst_19 = arith.constant 6.400000e+01 : f32
    %52 = vector.broadcast %cst_19 : f32 to vector<8x64xf32>
    %53 = arith.select %51, %52, %42 : vector<8x64xi1>, vector<8x64xf32>
    %cst_20 = arith.constant dense<0x7F800000> : vector<8xf32>
    %54 = vector.multi_reduction <minimumf>, %53, %cst_20 [1] : vector<8x64xf32> to vector<8xf32>
    %55 = vector.shape_cast %54 : vector<8xf32> to vector<8x1xf32>
    %c3_i32 = arith.constant 3 : i32
    %56 = vector.broadcast %c3_i32 : i32 to vector<8x8xi32>
    %57 = arith.cmpi eq, %19, %56 : vector<8x8xi32>
    %58 = vector.shape_cast %55 : vector<8x1xf32> to vector<8x1xf32>
    %59 = vector.broadcast %58 : vector<8x1xf32> to vector<8x8xf32>
    %60 = arith.select %57, %59, %49 : vector<8x8xi1>, vector<8x8xf32>
    %61 = vector.broadcast %55 : vector<8x1xf32> to vector<8x64xf32>
    %62 = arith.cmpf oeq, %53, %61 : vector<8x64xf32>
    %cst_21 = arith.constant 6.400000e+01 : f32
    %63 = vector.broadcast %cst_21 : f32 to vector<8x64xf32>
    %64 = arith.select %62, %63, %53 : vector<8x64xi1>, vector<8x64xf32>
    %cst_22 = arith.constant dense<0x7F800000> : vector<8xf32>
    %65 = vector.multi_reduction <minimumf>, %64, %cst_22 [1] : vector<8x64xf32> to vector<8xf32>
    %66 = vector.shape_cast %65 : vector<8xf32> to vector<8x1xf32>
    %c4_i32 = arith.constant 4 : i32
    %67 = vector.broadcast %c4_i32 : i32 to vector<8x8xi32>
    %68 = arith.cmpi eq, %19, %67 : vector<8x8xi32>
    %69 = vector.shape_cast %66 : vector<8x1xf32> to vector<8x1xf32>
    %70 = vector.broadcast %69 : vector<8x1xf32> to vector<8x8xf32>
    %71 = arith.select %68, %70, %60 : vector<8x8xi1>, vector<8x8xf32>
    %72 = vector.broadcast %66 : vector<8x1xf32> to vector<8x64xf32>
    %73 = arith.cmpf oeq, %64, %72 : vector<8x64xf32>
    %cst_23 = arith.constant 6.400000e+01 : f32
    %74 = vector.broadcast %cst_23 : f32 to vector<8x64xf32>
    %75 = arith.select %73, %74, %64 : vector<8x64xi1>, vector<8x64xf32>
    %cst_24 = arith.constant dense<0x7F800000> : vector<8xf32>
    %76 = vector.multi_reduction <minimumf>, %75, %cst_24 [1] : vector<8x64xf32> to vector<8xf32>
    %77 = vector.shape_cast %76 : vector<8xf32> to vector<8x1xf32>
    %c5_i32 = arith.constant 5 : i32
    %78 = vector.broadcast %c5_i32 : i32 to vector<8x8xi32>
    %79 = arith.cmpi eq, %19, %78 : vector<8x8xi32>
    %80 = vector.shape_cast %77 : vector<8x1xf32> to vector<8x1xf32>
    %81 = vector.broadcast %80 : vector<8x1xf32> to vector<8x8xf32>
    %82 = arith.select %79, %81, %71 : vector<8x8xi1>, vector<8x8xf32>
    %83 = vector.broadcast %77 : vector<8x1xf32> to vector<8x64xf32>
    %84 = arith.cmpf oeq, %75, %83 : vector<8x64xf32>
    %cst_25 = arith.constant 6.400000e+01 : f32
    %85 = vector.broadcast %cst_25 : f32 to vector<8x64xf32>
    %86 = arith.select %84, %85, %75 : vector<8x64xi1>, vector<8x64xf32>
    %cst_26 = arith.constant dense<0x7F800000> : vector<8xf32>
    %87 = vector.multi_reduction <minimumf>, %86, %cst_26 [1] : vector<8x64xf32> to vector<8xf32>
    %88 = vector.shape_cast %87 : vector<8xf32> to vector<8x1xf32>
    %c6_i32 = arith.constant 6 : i32
    %89 = vector.broadcast %c6_i32 : i32 to vector<8x8xi32>
    %90 = arith.cmpi eq, %19, %89 : vector<8x8xi32>
    %91 = vector.shape_cast %88 : vector<8x1xf32> to vector<8x1xf32>
    %92 = vector.broadcast %91 : vector<8x1xf32> to vector<8x8xf32>
    %93 = arith.select %90, %92, %82 : vector<8x8xi1>, vector<8x8xf32>
    %94 = vector.broadcast %88 : vector<8x1xf32> to vector<8x64xf32>
    %95 = arith.cmpf oeq, %86, %94 : vector<8x64xf32>
    %cst_27 = arith.constant 6.400000e+01 : f32
    %96 = vector.broadcast %cst_27 : f32 to vector<8x64xf32>
    %97 = arith.select %95, %96, %86 : vector<8x64xi1>, vector<8x64xf32>
    %cst_28 = arith.constant dense<0x7F800000> : vector<8xf32>
    %98 = vector.multi_reduction <minimumf>, %97, %cst_28 [1] : vector<8x64xf32> to vector<8xf32>
    %99 = vector.shape_cast %98 : vector<8xf32> to vector<8x1xf32>
    %c7_i32 = arith.constant 7 : i32
    %100 = vector.broadcast %c7_i32 : i32 to vector<8x8xi32>
    %101 = arith.cmpi eq, %19, %100 : vector<8x8xi32>
    %102 = vector.shape_cast %99 : vector<8x1xf32> to vector<8x1xf32>
    %103 = vector.broadcast %102 : vector<8x1xf32> to vector<8x8xf32>
    %104 = arith.select %101, %103, %93 : vector<8x8xi1>, vector<8x8xf32>
    %105 = vector.extract_strided_slice %104 {offsets = [0, 0], sizes = [8, 1], strides = [1, 1]} : vector<8x8xf32> to vector<8x1xf32>
    %cst_29 = arith.constant 6.400000e+01 : f32
    %106 = vector.broadcast %cst_29 : f32 to vector<8x1xf32>
    %107 = arith.cmpf oeq, %105, %106 : vector<8x1xf32>
    %cst_30 = arith.constant 0.000000e+00 : f32
    %108 = vector.broadcast %cst_30 : f32 to vector<8x1xf32>
    %109 = arith.select %107, %108, %105 : vector<8x1xi1>, vector<8x1xf32>
    %cst_31 = arith.constant 6.400000e+01 : f32
    %110 = vector.broadcast %cst_31 : f32 to vector<8x8xf32>
    %111 = arith.cmpf oeq, %104, %110 : vector<8x8xf32>
    %112 = vector.shape_cast %109 : vector<8x1xf32> to vector<8x1xf32>
    %113 = vector.broadcast %112 : vector<8x1xf32> to vector<8x8xf32>
    %114 = arith.select %111, %113, %104 : vector<8x8xi1>, vector<8x8xf32>
    %115 = arith.fptosi %114 : vector<8x8xf32> to vector<8x8xi32>
    %c0_32 = arith.constant 0 : index
    %c0_33 = arith.constant 0 : index
    %c0_34 = arith.constant 0 : index
    %116 = vector.load %arg5[%c0_32, %c0_33, %c0_34] : memref<1x8x8xi32, #tpu.memory_space<vmem>>, vector<1x8x8xi32>
    %117 = vector.shape_cast %116 : vector<1x8x8xi32> to vector<8x8xi32>
    %118 = vector.shape_cast %115 : vector<8x8xi32> to vector<1x8x8xi32>
    tpu.vector_store %arg5[%c0_32, %c0_33, %c0_34], %118 {strides = array<i32>} : memref<1x8x8xi32, #tpu.memory_space<vmem>>, vector<1x8x8xi32>,
    %cst_35 = arith.constant 1.000000e+00 : f32
    %119 = vector.broadcast %cst_35 : f32 to vector<8x64xf32>
    %120 = arith.cmpf ogt, %12, %119 : vector<8x64xf32>
    %cst_36 = arith.constant 6.400000e+01 : f32
    %121 = vector.broadcast %cst_36 : f32 to vector<8x64xf32>
    %122 = arith.select %120, %121, %14 : vector<8x64xi1>, vector<8x64xf32>
    %123 = tpu.iota {dimensions = array<i32: 1>} : vector<8x16xi32>
    %cst_37 = arith.constant 6.400000e+01 : f32
    %124 = vector.broadcast %cst_37 : f32 to vector<8x16xf32>
    %cst_38 = arith.constant dense<0x7F800000> : vector<8xf32>
    %125 = vector.multi_reduction <minimumf>, %122, %cst_38 [1] : vector<8x64xf32> to vector<8xf32>
    %126 = vector.shape_cast %125 : vector<8xf32> to vector<8x1xf32>
    %c0_i32_39 = arith.constant 0 : i32
    %127 = vector.broadcast %c0_i32_39 : i32 to vector<8x16xi32>
    %128 = arith.cmpi eq, %123, %127 : vector<8x16xi32>
    %129 = vector.shape_cast %126 : vector<8x1xf32> to vector<8x1xf32>
    %130 = vector.broadcast %129 : vector<8x1xf32> to vector<8x16xf32>
    %131 = arith.select %128, %130, %124 : vector<8x16xi1>, vector<8x16xf32>
    %132 = vector.broadcast %126 : vector<8x1xf32> to vector<8x64xf32>
    %133 = arith.cmpf oeq, %122, %132 : vector<8x64xf32>
    %cst_40 = arith.constant 6.400000e+01 : f32
    %134 = vector.broadcast %cst_40 : f32 to vector<8x64xf32>
    %135 = arith.select %133, %134, %122 : vector<8x64xi1>, vector<8x64xf32>
    %cst_41 = arith.constant dense<0x7F800000> : vector<8xf32>
    %136 = vector.multi_reduction <minimumf>, %135, %cst_41 [1] : vector<8x64xf32> to vector<8xf32>
    %137 = vector.shape_cast %136 : vector<8xf32> to vector<8x1xf32>
    %c1_i32_42 = arith.constant 1 : i32
    %138 = vector.broadcast %c1_i32_42 : i32 to vector<8x16xi32>
    %139 = arith.cmpi eq, %123, %138 : vector<8x16xi32>
    %140 = vector.shape_cast %137 : vector<8x1xf32> to vector<8x1xf32>
    %141 = vector.broadcast %140 : vector<8x1xf32> to vector<8x16xf32>
    %142 = arith.select %139, %141, %131 : vector<8x16xi1>, vector<8x16xf32>
    %143 = vector.broadcast %137 : vector<8x1xf32> to vector<8x64xf32>
    %144 = arith.cmpf oeq, %135, %143 : vector<8x64xf32>
    %cst_43 = arith.constant 6.400000e+01 : f32
    %145 = vector.broadcast %cst_43 : f32 to vector<8x64xf32>
    %146 = arith.select %144, %145, %135 : vector<8x64xi1>, vector<8x64xf32>
    %cst_44 = arith.constant dense<0x7F800000> : vector<8xf32>
    %147 = vector.multi_reduction <minimumf>, %146, %cst_44 [1] : vector<8x64xf32> to vector<8xf32>
    %148 = vector.shape_cast %147 : vector<8xf32> to vector<8x1xf32>
    %c2_i32_45 = arith.constant 2 : i32
    %149 = vector.broadcast %c2_i32_45 : i32 to vector<8x16xi32>
    %150 = arith.cmpi eq, %123, %149 : vector<8x16xi32>
    %151 = vector.shape_cast %148 : vector<8x1xf32> to vector<8x1xf32>
    %152 = vector.broadcast %151 : vector<8x1xf32> to vector<8x16xf32>
    %153 = arith.select %150, %152, %142 : vector<8x16xi1>, vector<8x16xf32>
    %154 = vector.broadcast %148 : vector<8x1xf32> to vector<8x64xf32>
    %155 = arith.cmpf oeq, %146, %154 : vector<8x64xf32>
    %cst_46 = arith.constant 6.400000e+01 : f32
    %156 = vector.broadcast %cst_46 : f32 to vector<8x64xf32>
    %157 = arith.select %155, %156, %146 : vector<8x64xi1>, vector<8x64xf32>
    %cst_47 = arith.constant dense<0x7F800000> : vector<8xf32>
    %158 = vector.multi_reduction <minimumf>, %157, %cst_47 [1] : vector<8x64xf32> to vector<8xf32>
    %159 = vector.shape_cast %158 : vector<8xf32> to vector<8x1xf32>
    %c3_i32_48 = arith.constant 3 : i32
    %160 = vector.broadcast %c3_i32_48 : i32 to vector<8x16xi32>
    %161 = arith.cmpi eq, %123, %160 : vector<8x16xi32>
    %162 = vector.shape_cast %159 : vector<8x1xf32> to vector<8x1xf32>
    %163 = vector.broadcast %162 : vector<8x1xf32> to vector<8x16xf32>
    %164 = arith.select %161, %163, %153 : vector<8x16xi1>, vector<8x16xf32>
    %165 = vector.broadcast %159 : vector<8x1xf32> to vector<8x64xf32>
    %166 = arith.cmpf oeq, %157, %165 : vector<8x64xf32>
    %cst_49 = arith.constant 6.400000e+01 : f32
    %167 = vector.broadcast %cst_49 : f32 to vector<8x64xf32>
    %168 = arith.select %166, %167, %157 : vector<8x64xi1>, vector<8x64xf32>
    %cst_50 = arith.constant dense<0x7F800000> : vector<8xf32>
    %169 = vector.multi_reduction <minimumf>, %168, %cst_50 [1] : vector<8x64xf32> to vector<8xf32>
    %170 = vector.shape_cast %169 : vector<8xf32> to vector<8x1xf32>
    %c4_i32_51 = arith.constant 4 : i32
    %171 = vector.broadcast %c4_i32_51 : i32 to vector<8x16xi32>
    %172 = arith.cmpi eq, %123, %171 : vector<8x16xi32>
    %173 = vector.shape_cast %170 : vector<8x1xf32> to vector<8x1xf32>
    %174 = vector.broadcast %173 : vector<8x1xf32> to vector<8x16xf32>
    %175 = arith.select %172, %174, %164 : vector<8x16xi1>, vector<8x16xf32>
    %176 = vector.broadcast %170 : vector<8x1xf32> to vector<8x64xf32>
    %177 = arith.cmpf oeq, %168, %176 : vector<8x64xf32>
    %cst_52 = arith.constant 6.400000e+01 : f32
    %178 = vector.broadcast %cst_52 : f32 to vector<8x64xf32>
    %179 = arith.select %177, %178, %168 : vector<8x64xi1>, vector<8x64xf32>
    %cst_53 = arith.constant dense<0x7F800000> : vector<8xf32>
    %180 = vector.multi_reduction <minimumf>, %179, %cst_53 [1] : vector<8x64xf32> to vector<8xf32>
    %181 = vector.shape_cast %180 : vector<8xf32> to vector<8x1xf32>
    %c5_i32_54 = arith.constant 5 : i32
    %182 = vector.broadcast %c5_i32_54 : i32 to vector<8x16xi32>
    %183 = arith.cmpi eq, %123, %182 : vector<8x16xi32>
    %184 = vector.shape_cast %181 : vector<8x1xf32> to vector<8x1xf32>
    %185 = vector.broadcast %184 : vector<8x1xf32> to vector<8x16xf32>
    %186 = arith.select %183, %185, %175 : vector<8x16xi1>, vector<8x16xf32>
    %187 = vector.broadcast %181 : vector<8x1xf32> to vector<8x64xf32>
    %188 = arith.cmpf oeq, %179, %187 : vector<8x64xf32>
    %cst_55 = arith.constant 6.400000e+01 : f32
    %189 = vector.broadcast %cst_55 : f32 to vector<8x64xf32>
    %190 = arith.select %188, %189, %179 : vector<8x64xi1>, vector<8x64xf32>
    %cst_56 = arith.constant dense<0x7F800000> : vector<8xf32>
    %191 = vector.multi_reduction <minimumf>, %190, %cst_56 [1] : vector<8x64xf32> to vector<8xf32>
    %192 = vector.shape_cast %191 : vector<8xf32> to vector<8x1xf32>
    %c6_i32_57 = arith.constant 6 : i32
    %193 = vector.broadcast %c6_i32_57 : i32 to vector<8x16xi32>
    %194 = arith.cmpi eq, %123, %193 : vector<8x16xi32>
    %195 = vector.shape_cast %192 : vector<8x1xf32> to vector<8x1xf32>
    %196 = vector.broadcast %195 : vector<8x1xf32> to vector<8x16xf32>
    %197 = arith.select %194, %196, %186 : vector<8x16xi1>, vector<8x16xf32>
    %198 = vector.broadcast %192 : vector<8x1xf32> to vector<8x64xf32>
    %199 = arith.cmpf oeq, %190, %198 : vector<8x64xf32>
    %cst_58 = arith.constant 6.400000e+01 : f32
    %200 = vector.broadcast %cst_58 : f32 to vector<8x64xf32>
    %201 = arith.select %199, %200, %190 : vector<8x64xi1>, vector<8x64xf32>
    %cst_59 = arith.constant dense<0x7F800000> : vector<8xf32>
    %202 = vector.multi_reduction <minimumf>, %201, %cst_59 [1] : vector<8x64xf32> to vector<8xf32>
    %203 = vector.shape_cast %202 : vector<8xf32> to vector<8x1xf32>
    %c7_i32_60 = arith.constant 7 : i32
    %204 = vector.broadcast %c7_i32_60 : i32 to vector<8x16xi32>
    %205 = arith.cmpi eq, %123, %204 : vector<8x16xi32>
    %206 = vector.shape_cast %203 : vector<8x1xf32> to vector<8x1xf32>
    %207 = vector.broadcast %206 : vector<8x1xf32> to vector<8x16xf32>
    %208 = arith.select %205, %207, %197 : vector<8x16xi1>, vector<8x16xf32>
    %209 = vector.broadcast %203 : vector<8x1xf32> to vector<8x64xf32>
    %210 = arith.cmpf oeq, %201, %209 : vector<8x64xf32>
    %cst_61 = arith.constant 6.400000e+01 : f32
    %211 = vector.broadcast %cst_61 : f32 to vector<8x64xf32>
    %212 = arith.select %210, %211, %201 : vector<8x64xi1>, vector<8x64xf32>
    %cst_62 = arith.constant dense<0x7F800000> : vector<8xf32>
    %213 = vector.multi_reduction <minimumf>, %212, %cst_62 [1] : vector<8x64xf32> to vector<8xf32>
    %214 = vector.shape_cast %213 : vector<8xf32> to vector<8x1xf32>
    %c8_i32 = arith.constant 8 : i32
    %215 = vector.broadcast %c8_i32 : i32 to vector<8x16xi32>
    %216 = arith.cmpi eq, %123, %215 : vector<8x16xi32>
    %217 = vector.shape_cast %214 : vector<8x1xf32> to vector<8x1xf32>
    %218 = vector.broadcast %217 : vector<8x1xf32> to vector<8x16xf32>
    %219 = arith.select %216, %218, %208 : vector<8x16xi1>, vector<8x16xf32>
    %220 = vector.broadcast %214 : vector<8x1xf32> to vector<8x64xf32>
    %221 = arith.cmpf oeq, %212, %220 : vector<8x64xf32>
    %cst_63 = arith.constant 6.400000e+01 : f32
    %222 = vector.broadcast %cst_63 : f32 to vector<8x64xf32>
    %223 = arith.select %221, %222, %212 : vector<8x64xi1>, vector<8x64xf32>
    %cst_64 = arith.constant dense<0x7F800000> : vector<8xf32>
    %224 = vector.multi_reduction <minimumf>, %223, %cst_64 [1] : vector<8x64xf32> to vector<8xf32>
    %225 = vector.shape_cast %224 : vector<8xf32> to vector<8x1xf32>
    %c9_i32 = arith.constant 9 : i32
    %226 = vector.broadcast %c9_i32 : i32 to vector<8x16xi32>
    %227 = arith.cmpi eq, %123, %226 : vector<8x16xi32>
    %228 = vector.shape_cast %225 : vector<8x1xf32> to vector<8x1xf32>
    %229 = vector.broadcast %228 : vector<8x1xf32> to vector<8x16xf32>
    %230 = arith.select %227, %229, %219 : vector<8x16xi1>, vector<8x16xf32>
    %231 = vector.broadcast %225 : vector<8x1xf32> to vector<8x64xf32>
    %232 = arith.cmpf oeq, %223, %231 : vector<8x64xf32>
    %cst_65 = arith.constant 6.400000e+01 : f32
    %233 = vector.broadcast %cst_65 : f32 to vector<8x64xf32>
    %234 = arith.select %232, %233, %223 : vector<8x64xi1>, vector<8x64xf32>
    %cst_66 = arith.constant dense<0x7F800000> : vector<8xf32>
    %235 = vector.multi_reduction <minimumf>, %234, %cst_66 [1] : vector<8x64xf32> to vector<8xf32>
    %236 = vector.shape_cast %235 : vector<8xf32> to vector<8x1xf32>
    %c10_i32 = arith.constant 10 : i32
    %237 = vector.broadcast %c10_i32 : i32 to vector<8x16xi32>
    %238 = arith.cmpi eq, %123, %237 : vector<8x16xi32>
    %239 = vector.shape_cast %236 : vector<8x1xf32> to vector<8x1xf32>
    %240 = vector.broadcast %239 : vector<8x1xf32> to vector<8x16xf32>
    %241 = arith.select %238, %240, %230 : vector<8x16xi1>, vector<8x16xf32>
    %242 = vector.broadcast %236 : vector<8x1xf32> to vector<8x64xf32>
    %243 = arith.cmpf oeq, %234, %242 : vector<8x64xf32>
    %cst_67 = arith.constant 6.400000e+01 : f32
    %244 = vector.broadcast %cst_67 : f32 to vector<8x64xf32>
    %245 = arith.select %243, %244, %234 : vector<8x64xi1>, vector<8x64xf32>
    %cst_68 = arith.constant dense<0x7F800000> : vector<8xf32>
    %246 = vector.multi_reduction <minimumf>, %245, %cst_68 [1] : vector<8x64xf32> to vector<8xf32>
    %247 = vector.shape_cast %246 : vector<8xf32> to vector<8x1xf32>
    %c11_i32 = arith.constant 11 : i32
    %248 = vector.broadcast %c11_i32 : i32 to vector<8x16xi32>
    %249 = arith.cmpi eq, %123, %248 : vector<8x16xi32>
    %250 = vector.shape_cast %247 : vector<8x1xf32> to vector<8x1xf32>
    %251 = vector.broadcast %250 : vector<8x1xf32> to vector<8x16xf32>
    %252 = arith.select %249, %251, %241 : vector<8x16xi1>, vector<8x16xf32>
    %253 = vector.broadcast %247 : vector<8x1xf32> to vector<8x64xf32>
    %254 = arith.cmpf oeq, %245, %253 : vector<8x64xf32>
    %cst_69 = arith.constant 6.400000e+01 : f32
    %255 = vector.broadcast %cst_69 : f32 to vector<8x64xf32>
    %256 = arith.select %254, %255, %245 : vector<8x64xi1>, vector<8x64xf32>
    %cst_70 = arith.constant dense<0x7F800000> : vector<8xf32>
    %257 = vector.multi_reduction <minimumf>, %256, %cst_70 [1] : vector<8x64xf32> to vector<8xf32>
    %258 = vector.shape_cast %257 : vector<8xf32> to vector<8x1xf32>
    %c12_i32 = arith.constant 12 : i32
    %259 = vector.broadcast %c12_i32 : i32 to vector<8x16xi32>
    %260 = arith.cmpi eq, %123, %259 : vector<8x16xi32>
    %261 = vector.shape_cast %258 : vector<8x1xf32> to vector<8x1xf32>
    %262 = vector.broadcast %261 : vector<8x1xf32> to vector<8x16xf32>
    %263 = arith.select %260, %262, %252 : vector<8x16xi1>, vector<8x16xf32>
    %264 = vector.broadcast %258 : vector<8x1xf32> to vector<8x64xf32>
    %265 = arith.cmpf oeq, %256, %264 : vector<8x64xf32>
    %cst_71 = arith.constant 6.400000e+01 : f32
    %266 = vector.broadcast %cst_71 : f32 to vector<8x64xf32>
    %267 = arith.select %265, %266, %256 : vector<8x64xi1>, vector<8x64xf32>
    %cst_72 = arith.constant dense<0x7F800000> : vector<8xf32>
    %268 = vector.multi_reduction <minimumf>, %267, %cst_72 [1] : vector<8x64xf32> to vector<8xf32>
    %269 = vector.shape_cast %268 : vector<8xf32> to vector<8x1xf32>
    %c13_i32 = arith.constant 13 : i32
    %270 = vector.broadcast %c13_i32 : i32 to vector<8x16xi32>
    %271 = arith.cmpi eq, %123, %270 : vector<8x16xi32>
    %272 = vector.shape_cast %269 : vector<8x1xf32> to vector<8x1xf32>
    %273 = vector.broadcast %272 : vector<8x1xf32> to vector<8x16xf32>
    %274 = arith.select %271, %273, %263 : vector<8x16xi1>, vector<8x16xf32>
    %275 = vector.broadcast %269 : vector<8x1xf32> to vector<8x64xf32>
    %276 = arith.cmpf oeq, %267, %275 : vector<8x64xf32>
    %cst_73 = arith.constant 6.400000e+01 : f32
    %277 = vector.broadcast %cst_73 : f32 to vector<8x64xf32>
    %278 = arith.select %276, %277, %267 : vector<8x64xi1>, vector<8x64xf32>
    %cst_74 = arith.constant dense<0x7F800000> : vector<8xf32>
    %279 = vector.multi_reduction <minimumf>, %278, %cst_74 [1] : vector<8x64xf32> to vector<8xf32>
    %280 = vector.shape_cast %279 : vector<8xf32> to vector<8x1xf32>
    %c14_i32 = arith.constant 14 : i32
    %281 = vector.broadcast %c14_i32 : i32 to vector<8x16xi32>
    %282 = arith.cmpi eq, %123, %281 : vector<8x16xi32>
    %283 = vector.shape_cast %280 : vector<8x1xf32> to vector<8x1xf32>
    %284 = vector.broadcast %283 : vector<8x1xf32> to vector<8x16xf32>
    %285 = arith.select %282, %284, %274 : vector<8x16xi1>, vector<8x16xf32>
    %286 = vector.broadcast %280 : vector<8x1xf32> to vector<8x64xf32>
    %287 = arith.cmpf oeq, %278, %286 : vector<8x64xf32>
    %cst_75 = arith.constant 6.400000e+01 : f32
    %288 = vector.broadcast %cst_75 : f32 to vector<8x64xf32>
    %289 = arith.select %287, %288, %278 : vector<8x64xi1>, vector<8x64xf32>
    %cst_76 = arith.constant dense<0x7F800000> : vector<8xf32>
    %290 = vector.multi_reduction <minimumf>, %289, %cst_76 [1] : vector<8x64xf32> to vector<8xf32>
    %291 = vector.shape_cast %290 : vector<8xf32> to vector<8x1xf32>
    %c15_i32 = arith.constant 15 : i32
    %292 = vector.broadcast %c15_i32 : i32 to vector<8x16xi32>
    %293 = arith.cmpi eq, %123, %292 : vector<8x16xi32>
    %294 = vector.shape_cast %291 : vector<8x1xf32> to vector<8x1xf32>
    %295 = vector.broadcast %294 : vector<8x1xf32> to vector<8x16xf32>
    %296 = arith.select %293, %295, %285 : vector<8x16xi1>, vector<8x16xf32>
    %297 = vector.extract_strided_slice %296 {offsets = [0, 0], sizes = [8, 1], strides = [1, 1]} : vector<8x16xf32> to vector<8x1xf32>
    %cst_77 = arith.constant 6.400000e+01 : f32
    %298 = vector.broadcast %cst_77 : f32 to vector<8x1xf32>
    %299 = arith.cmpf oeq, %297, %298 : vector<8x1xf32>
    %cst_78 = arith.constant 0.000000e+00 : f32
    %300 = vector.broadcast %cst_78 : f32 to vector<8x1xf32>
    %301 = arith.select %299, %300, %297 : vector<8x1xi1>, vector<8x1xf32>
    %cst_79 = arith.constant 6.400000e+01 : f32
    %302 = vector.broadcast %cst_79 : f32 to vector<8x16xf32>
    %303 = arith.cmpf oeq, %296, %302 : vector<8x16xf32>
    %304 = vector.shape_cast %301 : vector<8x1xf32> to vector<8x1xf32>
    %305 = vector.broadcast %304 : vector<8x1xf32> to vector<8x16xf32>
    %306 = arith.select %303, %305, %296 : vector<8x16xi1>, vector<8x16xf32>
    %307 = arith.fptosi %306 : vector<8x16xf32> to vector<8x16xi32>
    %c0_80 = arith.constant 0 : index
    %c0_81 = arith.constant 0 : index
    %c0_82 = arith.constant 0 : index
    %308 = vector.load %arg6[%c0_80, %c0_81, %c0_82] : memref<1x8x16xi32, #tpu.memory_space<vmem>>, vector<1x8x16xi32>
    %309 = vector.shape_cast %308 : vector<1x8x16xi32> to vector<8x16xi32>
    %310 = vector.shape_cast %307 : vector<8x16xi32> to vector<1x8x16xi32>
    tpu.vector_store %arg6[%c0_80, %c0_81, %c0_82], %310 {strides = array<i32>} : memref<1x8x16xi32, #tpu.memory_space<vmem>>, vector<1x8x16xi32>,
    return
  }
  func.func @transform_0(%arg0: i32) -> (i32, i32, i32) {
    %c0_i32 = arith.constant 0 : i32
    %c0_i32_0 = arith.constant 0 : i32
    %c0_i32_1 = arith.constant 0 : i32
    return %arg0, %c0_i32, %c0_i32_0 : i32, i32, i32
  }
  func.func @transform_1(%arg0: i32) -> (i32, i32, i32) {
    %c0_i32 = arith.constant 0 : i32
    %c0_i32_0 = arith.constant 0 : i32
    %c0_i32_1 = arith.constant 0 : i32
    return %arg0, %c0_i32, %c0_i32_0 : i32, i32, i32
  }
  func.func @transform_2(%arg0: i32) -> (i32, i32, i32) {
    %c0_i32 = arith.constant 0 : i32
    %c0_i32_0 = arith.constant 0 : i32
    %c0_i32_1 = arith.constant 0 : i32
    return %arg0, %c0_i32, %c0_i32_0 : i32, i32, i32
  }
  func.func @transform_3(%arg0: i32) -> (i32, i32, i32) {
    %c0_i32 = arith.constant 0 : i32
    %c0_i32_0 = arith.constant 0 : i32
    %c0_i32_1 = arith.constant 0 : i32
    return %arg0, %c0_i32, %c0_i32_0 : i32, i32, i32
  }
  func.func @transform_4(%arg0: i32) -> (i32, i32, i32) {
    %c0_i32 = arith.constant 0 : i32
    %c0_i32_0 = arith.constant 0 : i32
    %c0_i32_1 = arith.constant 0 : i32
    return %arg0, %c0_i32, %c0_i32_0 : i32, i32, i32
  }
  func.func @transform_5(%arg0: i32) -> (i32, i32, i32) {
    %c0_i32 = arith.constant 0 : i32
    %c0_i32_0 = arith.constant 0 : i32
    %c0_i32_1 = arith.constant 0 : i32
    return %arg0, %c0_i32, %c0_i32_0 : i32, i32, i32
  }
}

</mosaic_0001>

<bundles_post_ra>
// kernel: tpu_custom_call.1
= control target key start
LH: loop header
LB: loop body
LE: loop exit
PB: predicated region body
PF: predicated region fallthrough
CT: control target
= control target key end

     0   :  { %11 = vsyncpa [#allocation3], 0  ;;  %s1181_s0 = inlined_call_operand.vmem [shape: f32[2,8,4], index: 0, kind: input, shape index: {}]   ;;  %s1182_s1 = inlined_call_operand.vmem [shape: f32[2,4,64], index: 1, kind: input, shape index: {}]   ;;  %s1183_s2 = inlined_call_operand.vmem [shape: f32[2,8,1], index: 2, kind: input, shape index: {}]   ;;  %s1184_s3 = inlined_call_operand.vmem [shape: f32[2,1,64], index: 3, kind: input, shape index: {}]   ;;  %s1185_s4 = inlined_call_operand.hbm [shape: s32[2,8,8], index: 4, kind: output, shape index: {0}]   ;;  %s1186_s5 = inlined_call_operand.hbm [shape: s32[2,8,16], index: 5, kind: output, shape index: {1}]  }
   0x1   :  { %13 = vsyncpa [#allocation3 + $0x1], 0 }
   0x2   :  { %14 = vsyncpa [#allocation5], 0 }
   0x3   :  { %16 = vsyncpa [#allocation5 + $0x1], 0  ;;  %s920_s18 = smov 0   ;;  %s922_s19 = smov 0  }
   0x4   :  { %s924_s20 = smov 0   ;;  %s926_s21 = smov 0  }
   0x5 LB: > { %s941_s22 = sadd.s32 4294967295, %s883_s21   ;;  %s715_s23 = sadd.s32 4294967294, %s883_s21   ;;  %s883_s21 = sphi %s926_s21, %s1192_s21   ;;  %s879_s20 = sphi %s924_s20, %s1191_s20   ;;  %s875_s19 = sphi %s922_s19, %s1190_s19   ;;  %s871_s18 = sphi %s920_s18, %s1189_s18  }
   0x6   : > { %s945_s24 = sadd.s32 1, %s883_s21   ;;  %s133_s25 = sadd.s32 1, %s879_s20 }
   0x7   : > { %s130_s26 = ssub.s32 %s883_s21, %s945_s24  ;;  %p143_p0 = scmp.ne.s32.totalorder %s879_s20, %s875_s19 }
   0x8   : > { %p131_p1 = scmp.eq.s32.totalorder %s130_s26, 0  ;;  %p144_p2 = scmp.eq.s32.totalorder %s941_s22, 1 }
   0x9   : > { %p149_p3 = scmp.ne.s32.totalorder %s875_s19, %s871_s18  ;;  %p150_p4 = scmp.eq.s32.totalorder %s715_s23, 1 }
   0xa   : > { %s956_s27 = scalar_select %p131_p1, %s879_s20, %s133_s25  }
   0xb   : > { %p958_p5 = por %p144_p2, %p143_p0  ;;  %p962_p6 = por %p150_p4, %p149_p3 }
   0xc   : > { %p718_p7 = scmp.ge.s32.totalorder %s883_s21, 1  ;;  %p221_p8 = scmp.lt.s32.totalorder %s883_s21, 3 }
   0xe   : > { %p222_p9 = pnand %p718_p7, %p221_p8 }
   0xf   : > { %p264_p10 = scmp.lt.s32.totalorder (!%p222_p9), %s941_s22, 1  ;;  %s1086_s26 = sand.u32 (!%p222_p9), 1, %s875_s19  }
  0x10   : > { %225 = sbr.rel (%p222_p9) target bundleno = 2625 (0xa41), region = 36  ;;  %s560_s12 = scalar_lea.sflag (!%p222_p9), [#allocation3], %s1086_s26 }
  0x11   : > { %s888_s14 = smov (!%p222_p9), [#allocation2]  }
  0x12   : > { %s797_s15 = sshll.u32 (!%p222_p9), %s888_s14, 4  ;;  %s798_s15 = int_to_ptr.vmem [resolvable:$false] %s797_s15 }
  0x15   : > { %v885_v0 = vmov 0.0   ;;  %vm886_vm0 = vmmov 0   ;;  %s265_s30 = scalar_select %p264_p10, %s941_s22, 1  ;;  %v887_v1 = vmov 0   ;;  %vm291_vm1 = vcmask 1043456  }
  0x16   : > { %735 = vmatprep.subr.mxu0 %v885_v0  ;;  %737 = vmatprep.mubr.msk.f32.mxu0 %vm886_vm0, %v885_v0  ;;  %vm287_vm2 = vcmask 31744   ;;  %v373_v5 = vlaneseq  ;;  %vm378_vm3 = vcmask 523264  }
  0x17   : > { %791 = vset.pattern.permute.xlu0 %v887_v1  ;;  %792 = vset.pattern.permute.xlu1 %v887_v1  ;;  %s722_s6 = sshll.u32 %s265_s30, 2  ;;  %s721_s7 = sshll.u32 %s265_s30, 3 }
  0x18   : > { %s271_s10 = scalar_lea.vmem %s1182_s1, %s722_s6  ;;  %s267_s13 = scalar_lea.vmem %s1181_s0, %s721_s7  ;;  %v982_v7 = vand.u32 127, %v373_v5 }
  0x19   : > { %v280_v2 = vld [vmem:[%s271_s10] sm:$0xf]  ;;  %s275_s16 = scalar_lea.vmem %s1183_s2, %s721_s7  ;;  %s278_s25 = scalar_lea.vmem %s1184_s3, %s265_s30 }
  0x1a   : > { %v279_v3 = vld [vmem:[%s267_s13] sm:$0xff]  ;;  %736 = vmatpush3.msk.msra.mxu0 %vm291_vm1, %v280_v2  ;;  %v375_v12 = vcvt.s32.f32 %v982_v7  ;;  %s719_s30 = sshll.u32 %s1086_s26, 3  ;;  %s729_s7 = sshll.u32 %s941_s22, 7 }
  0x1b   : > { %v281_v4 = vld [vmem:[%s275_s16] sm:$0xff]  ;;  %738 = vmatmul.mubr.msk.f32.vlgmr.msra.gmra.mxu0 %vm287_vm2, %v279_v3  ;;  %s256_s6 = scalar_lea.vmem [#allocation2], %s719_s30  ;;  %s576_s10 = scalar_lea.hbm %s1185_s4, %s729_s7 }
  0x1c   : > { %284 = vperm.xlu0 %791, %v281_v4   ;;  %v726_v9 = vld [vmem:[%s278_s25] ss:$0 sm:$0xff]  ;;  %s578_s11 = sshll.u32 %s256_s6, 4  ;;  %s799_s16 = scalar_lea.vmem %s798_s15, 256  ;;  %s579_s11 = int_to_ptr.vmem [resolvable:$true] %s578_s11 }
  0x1d   : > { %s793_s13 = scalar_lea.vmem %s579_s11, 128  ;;  %p800_p0 = scmp.lt.s32.totalorder %s579_s11, %s798_s15 }
  0x1e   : > { %p794_p11 = scmp.ne.s32.totalorder %s579_s11, %s793_s13  ;;  %p801_p1 = scmp.lt.s32.totalorder %s799_s16, %s793_s13 }
  0x20   : > { %p795_p12 = pnand %p794_p11, %p958_p5  ;;  %p802_p2 = por %p801_p1, %p800_p0 }
  0x22   : > { %p796_p13 = pneg %p795_p12 }
  0x24   : > { %p803_p3 = pnand %p802_p2, %p796_p13 }
  0x97   : > { %v285_v6 = vpop.permute.xlu0 %284 }
  0xdb   : > { %v361_v8 = vpop.f32.mrf.mxu0 }
  0xdc   : > { %v362_v10 = vadd.f32 %v361_v8, %v285_v6 }
  0xdd   : > { %v739_v11 = vpop.f32.mrf.mxu0 }
  0xde   : > { %v372_v13 = vadd.f32 %v726_v9, %v362_v10 }
  0xe0   : > { %vm444_vm4 = vcmp.gt.f32.partialorder %v372_v13, 1.0  ;;  %vm376_vm5 = vcmp.gt.f32.partialorder %v372_v13, 0.25 }
  0xe1   : > { %v445_v14 = vsel %vm444_vm4, 64.0, %v375_v12  ;;  %v377_v15 = vsel %vm376_vm5, 64.0, %v375_v12 }
  0xe2   : > { %v446_v16 = vsel %vm378_vm3, %v445_v14, inf  ;;  %v379_v38 = vsel %vm378_vm3, %v377_v15, inf }
  0xe3   : > { %447 = vmin.xlane.f32.xlu0 %v446_v16 }
 0x16c   : > { %v986_v17 = vpop.xlane.xlu0 %447 }
 0x16d   : > { %vm450_vm6 = vcmp.eq.f32.partialorder %v445_v14, %v986_v17 }
 0x16e   : > { %v451_v18 = vsel %vm450_vm6, 64.0, %v445_v14 }
 0x16f   : > { %v452_v19 = vsel %vm378_vm3, %v451_v18, inf }
 0x170   : > { %453 = vmin.xlane.f32.xlu1 %v452_v19 }
 0x1f9   : > { %v990_v20 = vpop.xlane.xlu1 %453 }
 0x1fa   : > { %vm456_vm7 = vcmp.eq.f32.partialorder %v451_v18, %v990_v20 }
 0x1fb   : > { %v457_v21 = vsel %vm456_vm7, 64.0, %v451_v18 }
 0x1fc   : > { %v458_v22 = vsel %vm378_vm3, %v457_v21, inf }
 0x1fd   : > { %459 = vmin.xlane.f32.xlu1 %v458_v22 }
 0x286   : > { %v994_v23 = vpop.xlane.xlu1 %459 }
 0x287   : > { %vm462_vm8 = vcmp.eq.f32.partialorder %v457_v21, %v994_v23 }
 0x288   : > { %v463_v24 = vsel %vm462_vm8, 64.0, %v457_v21 }
 0x289   : > { %v464_v25 = vsel %vm378_vm3, %v463_v24, inf }
 0x28a   : > { %465 = vmin.xlane.f32.xlu1 %v464_v25 }
 0x313   : > { %v998_v26 = vpop.xlane.xlu1 %465 }
 0x314   : > { %vm468_vm9 = vcmp.eq.f32.partialorder %v463_v24, %v998_v26 }
 0x315   : > { %v469_v27 = vsel %vm468_vm9, 64.0, %v463_v24 }
 0x316   : > { %v470_v28 = vsel %vm378_vm3, %v469_v27, inf }
 0x317   : > { %471 = vmin.xlane.f32.xlu1 %v470_v28 }
 0x3a0   : > { %v1002_v29 = vpop.xlane.xlu1 %471 }
 0x3a1   : > { %vm474_vm10 = vcmp.eq.f32.partialorder %v469_v27, %v1002_v29 }
 0x3a2   : > { %v475_v30 = vsel %vm474_vm10, 64.0, %v469_v27 }
 0x3a3   : > { %v476_v31 = vsel %vm378_vm3, %v475_v30, inf }
 0x3a4   : > { %477 = vmin.xlane.f32.xlu1 %v476_v31 }
 0x42d   : > { %v1006_v32 = vpop.xlane.xlu1 %477 }
 0x42e   : > { %vm480_vm11 = vcmp.eq.f32.partialorder %v475_v30, %v1006_v32 }
 0x42f   : > { %v481_v33 = vsel %vm480_vm11, 64.0, %v475_v30 }
 0x430   : > { %v482_v34 = vsel %vm378_vm3, %v481_v33, inf }
 0x431   : > { %483 = vmin.xlane.f32.xlu1 %v482_v34 }
 0x4ba   : > { %v1010_v35 = vpop.xlane.xlu1 %483 }
 0x4bb   : > { %vm486_vm12 = vcmp.eq.f32.partialorder %v481_v33, %v1010_v35 }
 0x4bc   : > { %v487_v36 = vsel %vm486_vm12, 64.0, %v481_v33  ;;  %vm382_vm12 = vcmp.eq.s32.totalorder %v982_v7, 0 }
 0x4bd   : > { %v488_v37 = vsel %vm378_vm3, %v487_v36, inf }
 0x4be   : > { %489 = vmin.xlane.f32.xlu1 %v488_v37 }
 0x4c2   : > { %380 = vmin.xlane.f32.xlu1 %v379_v38  ;;  %v449_v38 = vsel %vm382_vm12, %v986_v17, 64.0 }
 0x547   : > { %v1015_v39 = vpop.xlane.xlu1 %489 }
 0x548   : > { %vm492_vm13 = vcmp.eq.f32.partialorder %v487_v36, %v1015_v39 }
 0x549   : > { %v493_v40 = vsel %vm492_vm13, 64.0, %v487_v36  ;;  %vm389_vm13 = vcmp.eq.s32.totalorder %v982_v7, 1 }
 0x54a   : > { %v494_v41 = vsel %vm378_vm3, %v493_v40, inf }
 0x54b   : > { %495 = vmin.xlane.f32.xlu1 %v494_v41  ;;  %v1019_v42 = vpop.xlane.xlu1 %380 }
 0x54c   : > { %vm384_vm14 = vcmp.eq.f32.partialorder %v377_v15, %v1019_v42  ;;  %v383_v19 = vsel %vm382_vm12, %v1019_v42, 64.0  ;;  %vm532_vm12 = vcmp.eq.s32.totalorder %v982_v7, 13 }
 0x54d   : > { %v385_v43 = vsel %vm384_vm14, 64.0, %v377_v15  ;;  %vm396_vm14 = vcmp.eq.s32.totalorder %v982_v7, 2 }
 0x54e   : > { %v386_v44 = vsel %vm378_vm3, %v385_v43, inf }
 0x54f   : > { %387 = vmin.xlane.f32.xlu0 %v386_v44 }
 0x5d4   : > { %v1023_v45 = vpop.xlane.xlu1 %495 }
 0x5d5   : > { %vm499_vm15 = vcmp.eq.f32.partialorder %v493_v40, %v1023_v45 }
 0x5d6   : > { %v500_v46 = vsel %vm499_vm15, 64.0, %v493_v40  ;;  %vm403_vm15 = vcmp.eq.s32.totalorder %v982_v7, 3  ;;  %v455_v40 = vsel %vm389_vm13, %v990_v20, %v449_v38 }
 0x5d7   : > { %v501_v47 = vsel %vm378_vm3, %v500_v46, inf  ;;  %v461_v41 = vsel %vm396_vm14, %v994_v23, %v455_v40 }
 0x5d8   : > { %v388_v48 = vpop.xlane.xlu0 %387  ;;  %502 = vmin.xlane.f32.xlu1 %v501_v47  ;;  %v467_v42 = vsel %vm403_vm15, %v998_v26, %v461_v41 }
 0x5d9   : > { %vm391_vm0 = vcmp.eq.f32.partialorder %v385_v43, %v388_v48  ;;  %v390_v21 = vsel %vm389_vm13, %v388_v48, %v383_v19  ;;  %vm539_vm13 = vcmp.eq.s32.totalorder %v982_v7, 14 }
 0x5da   : > { %v392_v49 = vsel %vm391_vm0, 64.0, %v385_v43  ;;  %vm410_vm0 = vcmp.eq.s32.totalorder %v982_v7, 4 }
 0x5db   : > { %v393_v50 = vsel %vm378_vm3, %v392_v49, inf  ;;  %v473_v43 = vsel %vm410_vm0, %v1002_v29, %v467_v42 }
 0x5dc   : > { %394 = vmin.xlane.f32.xlu0 %v393_v50 }
 0x661   : > { %v1028_v51 = vpop.xlane.xlu1 %502 }
 0x662   : > { %vm506_vm1 = vcmp.eq.f32.partialorder %v500_v46, %v1028_v51 }
 0x663   : > { %v507_v52 = vsel %vm506_vm1, 64.0, %v500_v46 }
 0x664   : > { %v508_v53 = vsel %vm378_vm3, %v507_v52, inf }
 0x665   : > { %v395_v54 = vpop.xlane.xlu0 %394  ;;  %509 = vmin.xlane.f32.xlu1 %v508_v53 }
 0x666   : > { %vm398_vm2 = vcmp.eq.f32.partialorder %v392_v49, %v395_v54  ;;  %v397_v22 = vsel %vm396_vm14, %v395_v54, %v390_v21  ;;  %vm546_vm14 = vcmp.eq.s32.totalorder %v982_v7, 15 }
 0x667   : > { %v399_v55 = vsel %vm398_vm2, 64.0, %v392_v49  ;;  %vm417_vm2 = vcmp.eq.s32.totalorder %v982_v7, 5 }
 0x668   : > { %v400_v56 = vsel %vm378_vm3, %v399_v55, inf  ;;  %v479_v20 = vsel %vm417_vm2, %v1006_v32, %v473_v43 }
 0x669   : > { %401 = vmin.xlane.f32.xlu0 %v400_v56 }
 0x6ee   : > { %v1033_v57 = vpop.xlane.xlu1 %509 }
 0x6ef   : > { %vm513_vm4 = vcmp.eq.f32.partialorder %v507_v52, %v1033_v57 }
 0x6f0   : > { %v514_v58 = vsel %vm513_vm4, 64.0, %v507_v52  ;;  %vm424_vm4 = vcmp.eq.s32.totalorder %v982_v7, 6 }
 0x6f1   : > { %v515_v59 = vsel %vm378_vm3, %v514_v58, inf  ;;  %v485_v23 = vsel %vm424_vm4, %v1010_v35, %v479_v20 }
 0x6f2   : > { %v402_v60 = vpop.xlane.xlu0 %401  ;;  %516 = vmin.xlane.f32.xlu1 %v515_v59 }
 0x6f3   : > { %vm405_vm5 = vcmp.eq.f32.partialorder %v399_v55, %v402_v60  ;;  %v404_v25 = vsel %vm403_vm15, %v402_v60, %v397_v22 }
 0x6f4   : > { %v406_v61 = vsel %vm405_vm5, 64.0, %v399_v55  ;;  %vm431_vm5 = vcmp.eq.s32.totalorder %v982_v7, 7 }
 0x6f5   : > { %v407_v62 = vsel %vm378_vm3, %v406_v61, inf  ;;  %v491_v29 = vsel %vm431_vm5, %v1015_v39, %v485_v23 }
 0x6f6   : > { %408 = vmin.xlane.f32.xlu0 %v407_v62 }
 0x77b   : > { %v1038_v63 = vpop.xlane.xlu1 %516 }
 0x77c   : > { %vm520_vm6 = vcmp.eq.f32.partialorder %v514_v58, %v1038_v63 }
 0x77d   : > { %v521_v0 = vsel %vm520_vm6, 64.0, %v514_v58 }
 0x77e   : > { %v522_v1 = vsel %vm378_vm3, %v521_v0, inf }
 0x77f   : > { %v409_v2 = vpop.xlane.xlu0 %408  ;;  %523 = vmin.xlane.f32.xlu1 %v522_v1 }
 0x780   : > { %vm412_vm7 = vcmp.eq.f32.partialorder %v406_v61, %v409_v2  ;;  %v411_v27 = vsel %vm410_vm0, %v409_v2, %v404_v25 }
 0x781   : > { %v413_v3 = vsel %vm412_vm7, 64.0, %v406_v61  ;;  %vm504_vm7 = vcmp.eq.s32.totalorder %v982_v7, 9 }
 0x782   : > { %v414_v4 = vsel %vm378_vm3, %v413_v3, inf }
 0x783   : > { %415 = vmin.xlane.f32.xlu0 %v414_v4 }
 0x808   : > { %v1043_v5 = vpop.xlane.xlu1 %523 }
 0x809   : > { %vm527_vm8 = vcmp.eq.f32.partialorder %v521_v0, %v1043_v5 }
 0x80a   : > { %v528_v6 = vsel %vm527_vm8, 64.0, %v521_v0  ;;  %vm511_vm8 = vcmp.eq.s32.totalorder %v982_v7, 10 }
 0x80b   : > { %v529_v8 = vsel %vm378_vm3, %v528_v6, inf }
 0x80c   : > { %v416_v9 = vpop.xlane.xlu0 %415  ;;  %530 = vmin.xlane.f32.xlu1 %v529_v8 }
 0x80d   : > { %vm419_vm9 = vcmp.eq.f32.partialorder %v413_v3, %v416_v9  ;;  %v418_v30 = vsel %vm417_vm2, %v416_v9, %v411_v27 }
 0x80e   : > { %v420_v10 = vsel %vm419_vm9, 64.0, %v413_v3  ;;  %vm442_vm9 = vcmask 64512  }
 0x80f   : > { %v421_v11 = vsel %vm378_vm3, %v420_v10, inf }
 0x810   : > { %422 = vmin.xlane.f32.xlu0 %v421_v11 }
 0x895   : > { %v1048_v12 = vpop.xlane.xlu1 %530 }
 0x896   : > { %vm534_vm10 = vcmp.eq.f32.partialorder %v528_v6, %v1048_v12 }
 0x897   : > { %v535_v13 = vsel %vm534_vm10, 64.0, %v528_v6  ;;  %vm518_vm10 = vcmp.eq.s32.totalorder %v982_v7, 11 }
 0x898   : > { %v536_v14 = vsel %vm378_vm3, %v535_v13, inf }
 0x899   : > { %v423_v15 = vpop.xlane.xlu0 %422  ;;  %537 = vmin.xlane.f32.xlu1 %v536_v14 }
 0x89a   : > { %vm426_vm11 = vcmp.eq.f32.partialorder %v420_v10, %v423_v15  ;;  %v425_v33 = vsel %vm424_vm4, %v423_v15, %v418_v30 }
 0x89b   : > { %v427_v16 = vsel %vm426_vm11, 64.0, %v420_v10  ;;  %vm525_vm11 = vcmp.eq.s32.totalorder %v982_v7, 12 }
 0x89c   : > { %v428_v18 = vsel %vm378_vm3, %v427_v16, inf }
 0x89d   : > { %429 = vmin.xlane.f32.xlu0 %v428_v18 }
 0x922   : > { %v538_v24 = vpop.xlane.xlu1 %537 }
 0x923   : > { %vm541_vm1 = vcmp.eq.f32.partialorder %v535_v13, %v538_v24 }
 0x924   : > { %v542_v28 = vsel %vm541_vm1, 64.0, %v535_v13 }
 0x925   : > { %v543_v31 = vsel %vm378_vm3, %v542_v28, inf  ;;  %vm497_vm3 = vcmp.eq.s32.totalorder %v982_v7, 8 }
 0x926   : > { %v430_v34 = vpop.xlane.xlu0 %429  ;;  %544 = vmin.xlane.f32.xlu1 %v543_v31  ;;  %v498_v32 = vsel %vm497_vm3, %v1023_v45, %v491_v29 }
 0x927   : > { %v432_v36 = vsel %vm431_vm5, %v430_v34, %v425_v33  ;;  %v505_v47 = vsel %vm504_vm7, %v1028_v51, %v498_v32 }
 0x928   : > { %vm433_vm6 = vcmp.eq.f32.partialorder %v432_v36, 64.0  ;;  %v512_v35 = vsel %vm511_vm8, %v1033_v57, %v505_v47 }
 0x929   : > { %v434_v37 = vsel %vm433_vm6, 0.0, %v432_v36  ;;  %v519_v39 = vsel %vm518_vm10, %v1038_v63, %v512_v35 }
 0x92a   : > { %437 = vperm.xlu0 %791, %v434_v37   ;;  %v526_v45 = vsel %vm525_vm11, %v1043_v5, %v519_v39 }
 0x92b   : > { %v533_v48 = vsel %vm532_vm12, %v1048_v12, %v526_v45 }
 0x92c   : > { %v540_v49 = vsel %vm539_vm13, %v538_v24, %v533_v48 }
 0x9a5   : > { %v438_v17 = vpop.permute.xlu0 %437 }
 0x9a6   : > { %v440_v44 = vsel %vm433_vm6, %v438_v17, %v432_v36 }
 0x9a7   : > { %v740_v26 = vtrunc.f32 %v440_v44 }
 0x9a9   : > { %v741_v46 = vcvt.f32.s32 %v740_v26 }
 0x9ab   : > { %443 = vst.msk [vmem:[%s256_s6] sm:$0xff] %vm442_vm9, %v741_v46 }
 0x9af   : > { %v545_v50 = vpop.xlane.xlu1 %544 }
 0x9b0   : > { %v547_v51 = vsel %vm546_vm14, %v545_v50, %v540_v49 }
 0x9b1   : > { %vm548_vm15 = vcmp.eq.f32.partialorder %v547_v51, 64.0 }
 0x9b2   : > { %v549_v52 = vsel %vm548_vm15, 0.0, %v547_v51 }
 0x9b3   : > { %552 = vperm.xlu1 %792, %v549_v52  }
 0x9b4   : > { %806 = shalt.err (!%p803_p3)
}
 0x9b5   : > { %s807_s17 = scalar_lea.hbm %s576_s10, 128  ;;  %s811_s6 = scalar_lea.hbm %s1185_s4, 256 }
 0x9b6   : > { %p808_p4 = scmp.ne.s32.totalorder %s576_s10, %s807_s17  ;;  %p812_p9 = scmp.lt.s32.totalorder %s576_s10, %s1185_s4 }
 0x9b7   : > { %p813_p10 = scmp.lt.s32.totalorder %s811_s6, %s807_s17 }
 0x9b8   : > { %p809_p7 = pnand %p808_p4, %p958_p5 }
 0x9b9   : > { %p814_p11 = por %p813_p10, %p812_p9 }
 0x9ba   : > { %p810_p8 = pneg %p809_p7 }
 0x9bc   : > { %p815_p12 = pnand %p814_p11, %p810_p8 }
 0x9be   : > { %818 = shalt.err (!%p815_p12)
}
 0x9bf   : > { %744 = dma.vmem_to_hbm [thread:$0]  (%p958_p5), %s579_s11, 128, %s576_s10, %s560_s12   ;;  %vm557_vm0 = vcmask 130048  }
 0x9c0   : > { %s263_s13 = scalar_lea.vmem [#allocation4], %s719_s30  ;;  %s589_s17 = scalar_lea.hbm %s1186_s5, %s729_s7 }
 0x9c1   : > { %s591_s14 = sshll.u32 %s263_s13, 4  ;;  %s565_s23 = scalar_lea.sflag [#allocation5], %s1086_s26  ;;  %s592_s14 = int_to_ptr.vmem [resolvable:$true] %s591_s14 }
 0x9c2   : > { %s819_s25 = scalar_lea.vmem %s592_s14, 128  ;;  %s889_s10 = smov [#allocation4]  }
 0x9c3   : > { %p820_p13 = scmp.ne.s32.totalorder %s592_s14, %s819_s25  ;;  %s823_s11 = sshll.u32 %s889_s10, 4  ;;  %s824_s11 = int_to_ptr.vmem [resolvable:$false] %s823_s11 }
 0x9c4   : > { %s825_s30 = scalar_lea.vmem %s824_s11, 256  ;;  %p826_p2 = scmp.lt.s32.totalorder %s592_s14, %s824_s11 }
 0x9c5   : > { %p821_p0 = pnand %p820_p13, %p958_p5  ;;  %p827_p3 = scmp.lt.s32.totalorder %s825_s30, %s819_s25 }
 0x9c7   : > { %p822_p1 = pneg %p821_p0  ;;  %p828_p4 = por %p827_p3, %p826_p2 }
 0x9c9   : > { %p829_p7 = pnand %p828_p4, %p822_p1 }
 0xa2e   : > { %v553_v7 = vpop.permute.xlu1 %552 }
 0xa2f   : > { %v555_v53 = vsel %vm548_vm15, %v553_v7, %v547_v51 }
 0xa30   : > { %v742_v54 = vtrunc.f32 %v555_v53 }
 0xa32   : > { %v743_v55 = vcvt.f32.s32 %v742_v54 }
 0xa34   : > { %558 = vst.msk [vmem:[%s263_s13] sm:$0xff] %vm557_vm0, %v743_v55 }
 0xa35   : > { %832 = shalt.err (!%p829_p7)
}
 0xa36   : > { %s833_s22 = scalar_lea.hbm %s589_s17, 128  ;;  %s837_s12 = scalar_lea.hbm %s1186_s5, 256 }
 0xa37   : > { %p834_p8 = scmp.ne.s32.totalorder %s589_s17, %s833_s22  ;;  %p838_p11 = scmp.lt.s32.totalorder %s589_s17, %s1186_s5 }
 0xa38   : > { %p839_p12 = scmp.lt.s32.totalorder %s837_s12, %s833_s22 }
 0xa39   : > { %p835_p9 = pnand %p834_p8, %p958_p5 }
 0xa3a   : > { %p840_p13 = por %p839_p12, %p838_p11 }
 0xa3b   : > { %p836_p10 = pneg %p835_p9 }
 0xa3d   : > { %p841_p0 = pnand %p840_p13, %p836_p10 }
 0xa3f   : > { %844 = shalt.err (!%p841_p0)
}
 0xa40   : > { %745 = dma.vmem_to_hbm [thread:$0]  (%p958_p5), %s592_s14, 128, %s589_s17, %s565_s23  }
 0xa41 PF: > { %p755_p1 = scmp.ge.s32.totalorder %s883_s21, 2  ;;  %s603_s9 = sand.u32 1, %s871_s18  }
 0xa42   : > { %s604_s13 = scalar_lea.sflag [#allocation3], %s603_s9 }
 0xa43   : > { %p749_p2 = pnand %p755_p1, %p962_p6 }
 0xa45   : > { %p750_p3 = pneg %p749_p2 }
 0xa47   : > { %862 = dma.done.wait (%p750_p3), %s604_s13, 128  }
 0xa48   : > { %864 = vsyncadd (%p750_p3), %s604_s13, 4294967168  ;;  %s613_s15 = scalar_lea.sflag [#allocation5], %s603_s9 }
 0xa49   : > { %866 = dma.done.wait (%p750_p3), %s613_s15, 128  }
 0xa4a   : > { %868 = vsyncadd (%p750_p3), %s613_s15, 4294967168  ;;  %p19_p5 = scmp.ge.s32.totalorder %s945_s24, 4   ;;  %s1189_s18 = smov %s875_s19 }
 0xa4b   : > { %s1190_s19 = smov %s879_s20  ;;  %s1191_s20 = smov %s956_s27 }
 0xa4c   : > { %s1192_s21 = smov %s945_s24  ;;  %21 = sbr.rel (!%p19_p5) target bundleno = 5 (0x5), region = 97 }
 0xa51   :  { %618 = vsyncpa [#allocation3], 1 }
 0xa52   :  { %620 = vsyncpa [#allocation3 + $0x1], 1 }
 0xa53   :  { %621 = vsyncpa [#allocation5], 1 }
 0xa54   :  { %623 = vsyncpa [#allocation5 + $0x1], 1 }

</bundles_post_ra>
